<compile_context>
chip_gen: v6e
topology: v6e:2x2x1
jax: 0.10.0
libtpu: 0.0.40
codegen_flags: <defaults>
</compile_context>

<pallas_src>
from functools import partial

import jax
import jax.numpy as jnp
from jax.experimental import pallas as pl
from jax.experimental.pallas import tpu as pltpu


def _attn_kernel(x_ref, wqkv_ref, wout_ref, bo_ref, out_ref, *, heads, dim_head, b_tile):
    # x_ref:    (b_tile, c, seq)   bf16, channel-major
    # wqkv_ref: (3*hidden, c)      bf16, q-rows pre-scaled by dim_head**-0.5
    # wout_ref: (c, hidden)        bf16
    # bo_ref:   (c, 1)             f32
    # out_ref:  (b_tile, c, seq)   f32
    hidden = heads * dim_head
    wqkv = wqkv_ref[...]
    wout = wout_ref[...]
    bias = bo_ref[...]

    for bb in range(b_tile):                      # static unroll over the batch tile
        x_cm = x_ref[bb]                          # (c, seq) bf16

        # Fused QKV projection: one wide matmul, lane-dense output (3*hidden, seq).
        qkv = jnp.dot(wqkv, x_cm, preferred_element_type=jnp.float32)
        qkv_bf = qkv.astype(jnp.bfloat16)

        head_outs = []
        # heads=4 (module default) -> static unroll; per-head temporaries are small at
        # these shapes (see TODO above for large-seq flash-style restructuring).
        for hh in range(heads):
            o = hh * dim_head
            q_h = qkv_bf[o:o + dim_head]                              # (dh, seq_i)
            k_h = qkv_bf[hidden + o:hidden + o + dim_head]            # (dh, seq_j)
            v_h = qkv_bf[2 * hidden + o:2 * hidden + o + dim_head]    # (dh, seq_j)

            # sim^T[j, i] = sum_d k[d, j] * q[d, i]   (contract the sublane dh axis)
            sim_t = jax.lax.dot_general(
                k_h, q_h, (((0,), (0,)), ((), ())),
                preferred_element_type=jnp.float32)                   # (seq_j, seq_i) f32

            # Softmax over j (sublane axis) -> max / sum come out lane-oriented (1, seq_i).
            m = jnp.max(sim_t, axis=0, keepdims=True)                 # (1, seq_i)
            p_t = jnp.exp(sim_t - m)                                  # f32, unnormalized
            denom = jnp.sum(p_t, axis=0, keepdims=True)               # (1, seq_i) f32

            # Unnormalized o_h, then deferred normalization via EUP reciprocal.
            o_h = jnp.dot(v_h, p_t.astype(jnp.bfloat16),
                          preferred_element_type=jnp.float32)         # (dh, seq_i) f32
            o_h = o_h * pl.reciprocal(denom, approx=True)
            head_outs.append(o_h.astype(jnp.bfloat16))

        # Concatenate heads -> (hidden=128, seq); single K=128 output projection.
        o_cat = jnp.concatenate(head_outs, axis=0)                    # (hidden, seq) bf16
        y = jnp.dot(wout, o_cat, preferred_element_type=jnp.float32)  # (c, seq) f32
        out_ref[bb] = (y + bias).astype(out_ref.dtype)


def _pick_b_tile(b):
    # Keep the grid length >= 2 (two TensorCores on v7x) while amortizing per-step
    # overhead for larger batches.
    for cand in (8, 4, 2):
        if b % cand == 0 and b // cand >= 2:
            return cand
    return 1


def attention_forward(x, w_qkv, w_out, b_out, *, heads=4, dim_head=32, b_tile=None):
    """x: (b, c, h, w); w_qkv: (3*heads*dim_head, c, 1, 1); w_out: (c, heads*dim_head, 1, 1);
    b_out: (c,). Returns (b, c, h, w) float32."""
    b, c, h, w = x.shape
    seq = h * w
    hidden = heads * dim_head
    scale = float(dim_head) ** -0.5

    if b_tile is None:
        b_tile = _pick_b_tile(b)
    assert b % b_tile == 0

    # Channel-major activation: plain reshape of NCHW (no transpose), bf16 MXU operand.
    x_cm = x.reshape(b, c, seq).astype(jnp.bfloat16)

    # Weights: fold the q scale in f32, then cast to bf16.
    w_qkv2 = w_qkv.reshape(3 * hidden, c).astype(jnp.float32)
    w_qkv2 = w_qkv2.at[:hidden].multiply(scale)
    w_qkv_bf = w_qkv2.astype(jnp.bfloat16)                            # (3*hidden, c)
    w_out_bf = w_out.reshape(c, hidden).astype(jnp.bfloat16)          # (c, hidden)
    b_out2 = b_out.reshape(c, 1).astype(jnp.float32)                  # (c, 1)

    kernel = partial(_attn_kernel, heads=heads, dim_head=dim_head, b_tile=b_tile)

    out = pl.pallas_call(
        kernel,
        out_shape=jax.ShapeDtypeStruct((b, c, seq), jnp.float32),
        grid=(b // b_tile,),
        in_specs=[
            pl.BlockSpec((b_tile, c, seq), lambda i: (i, 0, 0)),
            pl.BlockSpec((3 * hidden, c), lambda i: (0, 0)),
            pl.BlockSpec((c, hidden), lambda i: (0, 0)),
            pl.BlockSpec((c, 1), lambda i: (0, 0)),
        ],
        out_specs=pl.BlockSpec((b_tile, c, seq), lambda i: (i, 0, 0)),
        compiler_params=pltpu.CompilerParams(
            dimension_semantics=("parallel",)),   # shard batch tiles across TCs
    )(x_cm, w_qkv_bf, w_out_bf, b_out2)

    # Channel-major output reshapes straight back to NCHW (no transpose).
    return out.reshape(b, c, h, w)


def _reference(x, w_qkv, w_out, b_out, *, heads, dim_head):
    b, c, h, w = x.shape
    hidden = heads * dim_head
    scale = float(dim_head) ** -0.5
    seq = h * w
    hp = jax.lax.Precision.HIGHEST

    x_flat = x.reshape(b, c, seq).astype(jnp.float32)
    qkv = jnp.einsum('oc,bcs->bos', w_qkv.reshape(3 * hidden, c), x_flat, precision=hp)
    q, k, v = jnp.split(qkv, 3, axis=1)
    q = q.reshape(b, heads, dim_head, seq) * scale
    k = k.reshape(b, heads, dim_head, seq)
    v = v.reshape(b, heads, dim_head, seq)
    sim = jnp.einsum('bhdi,bhdj->bhij', q, k, precision=hp)
    attn = jax.nn.softmax(sim, axis=-1)
    out = jnp.einsum('bhij,bhdj->bhid', attn, v, precision=hp)          # (b, H, seq, dh)
    out = jnp.transpose(out, (0, 1, 3, 2)).reshape(b, hidden, seq)      # channel = h*dh + d
    y = jnp.einsum('oc,bcs->bos', w_out.reshape(c, hidden), out, precision=hp)
    y = y + b_out.reshape(1, c, 1)
    return y.reshape(b, c, h, w)


if __name__ == "__main__":
    # Small config consistent with the module defaults: heads=4, dim_head=32.
    dim = 32          # channels
    heads = 4
    dim_head = 32
    hidden = heads * dim_head
    b, h, w = 2, 8, 8  # seq = 64

    key = jax.random.PRNGKey(0)
    kx, kqkv, kwo, kbo = jax.random.split(key, 4)

    x = jax.random.normal(kx, (b, dim, h, w), dtype=jnp.float32)
    # Small-scale weights keep softmax logits moderate (like trained conv weights).
    w_qkv = jax.random.normal(kqkv, (3 * hidden, dim, 1, 1), dtype=jnp.float32) * 0.1
    w_out = jax.random.normal(kwo, (dim, hidden, 1, 1), dtype=jnp.float32) * 0.1
    b_out = jax.random.normal(kbo, (dim,), dtype=jnp.float32) * 0.1

    out = attention_forward(x, w_qkv, w_out, b_out, heads=heads, dim_head=dim_head)
    out = jax.block_until_ready(out)

    ref = _reference(x, w_qkv, w_out, b_out, heads=heads, dim_head=dim_head)
    assert out.shape == (b, dim, h, w), out.shape
    max_err = float(jnp.max(jnp.abs(out - ref)))
    # bf16 MXU operands + approx reciprocal -> loosen tolerance vs. f32 reference.
    assert jnp.allclose(out, ref, atol=5e-2, rtol=5e-2), \
        f"mismatch vs reference (max abs err {max_err})"

    print("KERNEL_OK")
</pallas_src>

<mosaic_0001>
module attributes {stable_mosaic.version = 11 : i64} {
  func.func @_attn_kernel(%arg0: i32, %arg1: memref<1x32x64xbf16, #tpu.memory_space<vmem>>, %arg2: memref<384x32xbf16, #tpu.memory_space<vmem>>, %arg3: memref<32x128xbf16, #tpu.memory_space<vmem>>, %arg4: memref<32x1xf32, #tpu.memory_space<vmem>>, %arg5: memref<1x32x64xf32, #tpu.memory_space<vmem>>) attributes {dimension_semantics = [#tpu.dimension_semantics<parallel>], iteration_bounds = array<i64: 2>, scalar_prefetch = 0 : i64, scratch_operands = 0 : i64, tpu.core_type = #tpu.core_type<tc>, window_params = [{transform_indices = @transform_0, window_bounds = array<i64: 1, 32, 64>}, {pipeline_mode = #tpu.pipeline_mode<synchronous>, transform_indices = @transform_1, window_bounds = array<i64: 384, 32>}, {pipeline_mode = #tpu.pipeline_mode<synchronous>, transform_indices = @transform_2, window_bounds = array<i64: 32, 128>}, {pipeline_mode = #tpu.pipeline_mode<synchronous>, transform_indices = @transform_3, window_bounds = array<i64: 32, 1>}, {transform_indices = @transform_4, window_bounds = array<i64: 1, 32, 64>}]} {
    %c0 = arith.constant 0 : index
    %c0_0 = arith.constant 0 : index
    %0 = vector.load %arg2[%c0, %c0_0] : memref<384x32xbf16, #tpu.memory_space<vmem>>, vector<384x32xbf16>
    %c0_1 = arith.constant 0 : index
    %c0_2 = arith.constant 0 : index
    %1 = vector.load %arg3[%c0_1, %c0_2] : memref<32x128xbf16, #tpu.memory_space<vmem>>, vector<32x128xbf16>
    %c0_3 = arith.constant 0 : index
    %c0_4 = arith.constant 0 : index
    %2 = vector.load %arg4[%c0_3, %c0_4] : memref<32x1xf32, #tpu.memory_space<vmem>>, vector<32x1xf32>
    %c0_5 = arith.constant 0 : index
    %c0_6 = arith.constant 0 : index
    %c0_7 = arith.constant 0 : index
    %3 = vector.load %arg1[%c0_5, %c0_6, %c0_7] : memref<1x32x64xbf16, #tpu.memory_space<vmem>>, vector<1x32x64xbf16>
    %4 = vector.shape_cast %3 : vector<1x32x64xbf16> to vector<32x64xbf16>
    %cst = arith.constant dense<0.000000e+00> : vector<384x64xf32>
    %5 = tpu.matmul %0, %4, %cst {dimension_numbers = #tpu.dot_dimension_numbers<[1], [0], [0], [1], [0, 0, 1, 1], [], []>} : vector<384x32xbf16>, vector<32x64xbf16>, vector<384x64xf32> -> vector<384x64xf32>
    %6 = arith.truncf %5 : vector<384x64xf32> to vector<384x64xbf16>
    %7 = vector.extract_strided_slice %6 {offsets = [0, 0], sizes = [32, 64], strides = [1, 1]} : vector<384x64xbf16> to vector<32x64xbf16>
    %8 = vector.extract_strided_slice %6 {offsets = [128, 0], sizes = [32, 64], strides = [1, 1]} : vector<384x64xbf16> to vector<32x64xbf16>
    %9 = vector.extract_strided_slice %6 {offsets = [256, 0], sizes = [32, 64], strides = [1, 1]} : vector<384x64xbf16> to vector<32x64xbf16>
    %cst_8 = arith.constant dense<0.000000e+00> : vector<64x64xf32>
    %10 = tpu.matmul %8, %7, %cst_8 {dimension_numbers = #tpu.dot_dimension_numbers<[0], [0], [1], [1], [0, 1, 1, 1], [], []>} : vector<32x64xbf16>, vector<32x64xbf16>, vector<64x64xf32> -> vector<64x64xf32>
    %cst_9 = arith.constant dense<0xFF800000> : vector<64xf32>
    %11 = vector.multi_reduction <maximumf>, %10, %cst_9 [0] : vector<64x64xf32> to vector<64xf32>
    %12 = vector.shape_cast %11 : vector<64xf32> to vector<1x64xf32>
    %13 = vector.broadcast %12 : vector<1x64xf32> to vector<64x64xf32>
    %14 = arith.subf %10, %13 : vector<64x64xf32>
    %15 = math.exp %14 : vector<64x64xf32>
    %cst_10 = arith.constant dense<0.000000e+00> : vector<64xf32>
    %16 = vector.multi_reduction <add>, %15, %cst_10 [0] : vector<64x64xf32> to vector<64xf32>
    %17 = vector.shape_cast %16 : vector<64xf32> to vector<1x64xf32>
    %18 = arith.truncf %15 : vector<64x64xf32> to vector<64x64xbf16>
    %cst_11 = arith.constant dense<0.000000e+00> : vector<32x64xf32>
    %19 = tpu.matmul %9, %18, %cst_11 {dimension_numbers = #tpu.dot_dimension_numbers<[1], [0], [0], [1], [0, 0, 1, 1], [], []>} : vector<32x64xbf16>, vector<64x64xbf16>, vector<32x64xf32> -> vector<32x64xf32>
    %20 = tpu.reciprocal %17 {approx = true} : vector<1x64xf32> -> vector<1x64xf32>
    %21 = vector.broadcast %20 : vector<1x64xf32> to vector<32x64xf32>
    %22 = arith.mulf %19, %21 : vector<32x64xf32>
    %23 = arith.truncf %22 : vector<32x64xf32> to vector<32x64xbf16>
    %24 = vector.extract_strided_slice %6 {offsets = [32, 0], sizes = [32, 64], strides = [1, 1]} : vector<384x64xbf16> to vector<32x64xbf16>
    %25 = vector.extract_strided_slice %6 {offsets = [160, 0], sizes = [32, 64], strides = [1, 1]} : vector<384x64xbf16> to vector<32x64xbf16>
    %26 = vector.extract_strided_slice %6 {offsets = [288, 0], sizes = [32, 64], strides = [1, 1]} : vector<384x64xbf16> to vector<32x64xbf16>
    %cst_12 = arith.constant dense<0.000000e+00> : vector<64x64xf32>
    %27 = tpu.matmul %25, %24, %cst_12 {dimension_numbers = #tpu.dot_dimension_numbers<[0], [0], [1], [1], [0, 1, 1, 1], [], []>} : vector<32x64xbf16>, vector<32x64xbf16>, vector<64x64xf32> -> vector<64x64xf32>
    %cst_13 = arith.constant dense<0xFF800000> : vector<64xf32>
    %28 = vector.multi_reduction <maximumf>, %27, %cst_13 [0] : vector<64x64xf32> to vector<64xf32>
    %29 = vector.shape_cast %28 : vector<64xf32> to vector<1x64xf32>
    %30 = vector.broadcast %29 : vector<1x64xf32> to vector<64x64xf32>
    %31 = arith.subf %27, %30 : vector<64x64xf32>
    %32 = math.exp %31 : vector<64x64xf32>
    %cst_14 = arith.constant dense<0.000000e+00> : vector<64xf32>
    %33 = vector.multi_reduction <add>, %32, %cst_14 [0] : vector<64x64xf32> to vector<64xf32>
    %34 = vector.shape_cast %33 : vector<64xf32> to vector<1x64xf32>
    %35 = arith.truncf %32 : vector<64x64xf32> to vector<64x64xbf16>
    %cst_15 = arith.constant dense<0.000000e+00> : vector<32x64xf32>
    %36 = tpu.matmul %26, %35, %cst_15 {dimension_numbers = #tpu.dot_dimension_numbers<[1], [0], [0], [1], [0, 0, 1, 1], [], []>} : vector<32x64xbf16>, vector<64x64xbf16>, vector<32x64xf32> -> vector<32x64xf32>
    %37 = tpu.reciprocal %34 {approx = true} : vector<1x64xf32> -> vector<1x64xf32>
    %38 = vector.broadcast %37 : vector<1x64xf32> to vector<32x64xf32>
    %39 = arith.mulf %36, %38 : vector<32x64xf32>
    %40 = arith.truncf %39 : vector<32x64xf32> to vector<32x64xbf16>
    %41 = vector.extract_strided_slice %6 {offsets = [64, 0], sizes = [32, 64], strides = [1, 1]} : vector<384x64xbf16> to vector<32x64xbf16>
    %42 = vector.extract_strided_slice %6 {offsets = [192, 0], sizes = [32, 64], strides = [1, 1]} : vector<384x64xbf16> to vector<32x64xbf16>
    %43 = vector.extract_strided_slice %6 {offsets = [320, 0], sizes = [32, 64], strides = [1, 1]} : vector<384x64xbf16> to vector<32x64xbf16>
    %cst_16 = arith.constant dense<0.000000e+00> : vector<64x64xf32>
    %44 = tpu.matmul %42, %41, %cst_16 {dimension_numbers = #tpu.dot_dimension_numbers<[0], [0], [1], [1], [0, 1, 1, 1], [], []>} : vector<32x64xbf16>, vector<32x64xbf16>, vector<64x64xf32> -> vector<64x64xf32>
    %cst_17 = arith.constant dense<0xFF800000> : vector<64xf32>
    %45 = vector.multi_reduction <maximumf>, %44, %cst_17 [0] : vector<64x64xf32> to vector<64xf32>
    %46 = vector.shape_cast %45 : vector<64xf32> to vector<1x64xf32>
    %47 = vector.broadcast %46 : vector<1x64xf32> to vector<64x64xf32>
    %48 = arith.subf %44, %47 : vector<64x64xf32>
    %49 = math.exp %48 : vector<64x64xf32>
    %cst_18 = arith.constant dense<0.000000e+00> : vector<64xf32>
    %50 = vector.multi_reduction <add>, %49, %cst_18 [0] : vector<64x64xf32> to vector<64xf32>
    %51 = vector.shape_cast %50 : vector<64xf32> to vector<1x64xf32>
    %52 = arith.truncf %49 : vector<64x64xf32> to vector<64x64xbf16>
    %cst_19 = arith.constant dense<0.000000e+00> : vector<32x64xf32>
    %53 = tpu.matmul %43, %52, %cst_19 {dimension_numbers = #tpu.dot_dimension_numbers<[1], [0], [0], [1], [0, 0, 1, 1], [], []>} : vector<32x64xbf16>, vector<64x64xbf16>, vector<32x64xf32> -> vector<32x64xf32>
    %54 = tpu.reciprocal %51 {approx = true} : vector<1x64xf32> -> vector<1x64xf32>
    %55 = vector.broadcast %54 : vector<1x64xf32> to vector<32x64xf32>
    %56 = arith.mulf %53, %55 : vector<32x64xf32>
    %57 = arith.truncf %56 : vector<32x64xf32> to vector<32x64xbf16>
    %58 = vector.extract_strided_slice %6 {offsets = [96, 0], sizes = [32, 64], strides = [1, 1]} : vector<384x64xbf16> to vector<32x64xbf16>
    %59 = vector.extract_strided_slice %6 {offsets = [224, 0], sizes = [32, 64], strides = [1, 1]} : vector<384x64xbf16> to vector<32x64xbf16>
    %60 = vector.extract_strided_slice %6 {offsets = [352, 0], sizes = [32, 64], strides = [1, 1]} : vector<384x64xbf16> to vector<32x64xbf16>
    %cst_20 = arith.constant dense<0.000000e+00> : vector<64x64xf32>
    %61 = tpu.matmul %59, %58, %cst_20 {dimension_numbers = #tpu.dot_dimension_numbers<[0], [0], [1], [1], [0, 1, 1, 1], [], []>} : vector<32x64xbf16>, vector<32x64xbf16>, vector<64x64xf32> -> vector<64x64xf32>
    %cst_21 = arith.constant dense<0xFF800000> : vector<64xf32>
    %62 = vector.multi_reduction <maximumf>, %61, %cst_21 [0] : vector<64x64xf32> to vector<64xf32>
    %63 = vector.shape_cast %62 : vector<64xf32> to vector<1x64xf32>
    %64 = vector.broadcast %63 : vector<1x64xf32> to vector<64x64xf32>
    %65 = arith.subf %61, %64 : vector<64x64xf32>
    %66 = math.exp %65 : vector<64x64xf32>
    %cst_22 = arith.constant dense<0.000000e+00> : vector<64xf32>
    %67 = vector.multi_reduction <add>, %66, %cst_22 [0] : vector<64x64xf32> to vector<64xf32>
    %68 = vector.shape_cast %67 : vector<64xf32> to vector<1x64xf32>
    %69 = arith.truncf %66 : vector<64x64xf32> to vector<64x64xbf16>
    %cst_23 = arith.constant dense<0.000000e+00> : vector<32x64xf32>
    %70 = tpu.matmul %60, %69, %cst_23 {dimension_numbers = #tpu.dot_dimension_numbers<[1], [0], [0], [1], [0, 0, 1, 1], [], []>} : vector<32x64xbf16>, vector<64x64xbf16>, vector<32x64xf32> -> vector<32x64xf32>
    %71 = tpu.reciprocal %68 {approx = true} : vector<1x64xf32> -> vector<1x64xf32>
    %72 = vector.broadcast %71 : vector<1x64xf32> to vector<32x64xf32>
    %73 = arith.mulf %70, %72 : vector<32x64xf32>
    %74 = arith.truncf %73 : vector<32x64xf32> to vector<32x64xbf16>
    %75 = tpu.concatenate %23, %40, %57, %74 in 0 : vector<32x64xbf16>, vector<32x64xbf16>, vector<32x64xbf16>, vector<32x64xbf16> -> vector<128x64xbf16>
    %cst_24 = arith.constant dense<0.000000e+00> : vector<32x64xf32>
    %76 = tpu.matmul %1, %75, %cst_24 {dimension_numbers = #tpu.dot_dimension_numbers<[1], [0], [0], [1], [0, 0, 1, 1], [], []>} : vector<32x128xbf16>, vector<128x64xbf16>, vector<32x64xf32> -> vector<32x64xf32>
    %77 = vector.broadcast %2 : vector<32x1xf32> to vector<32x64xf32>
    %78 = arith.addf %76, %77 : vector<32x64xf32>
    %c0_25 = arith.constant 0 : index
    %c0_26 = arith.constant 0 : index
    %c0_27 = arith.constant 0 : index
    %79 = vector.load %arg5[%c0_25, %c0_26, %c0_27] : memref<1x32x64xf32, #tpu.memory_space<vmem>>, vector<1x32x64xf32>
    %80 = vector.shape_cast %79 : vector<1x32x64xf32> to vector<32x64xf32>
    %81 = vector.shape_cast %78 : vector<32x64xf32> to vector<1x32x64xf32>
    tpu.vector_store %arg5[%c0_25, %c0_26, %c0_27], %81 {strides = array<i32>} : memref<1x32x64xf32, #tpu.memory_space<vmem>>, vector<1x32x64xf32>,
    return
  }
  func.func @transform_0(%arg0: i32) -> (i32, i32, i32) {
    %c0_i32 = arith.constant 0 : i32
    %c0_i32_0 = arith.constant 0 : i32
    %c0_i32_1 = arith.constant 0 : i32
    return %arg0, %c0_i32, %c0_i32_0 : i32, i32, i32
  }
  func.func @transform_1(%arg0: i32) -> (i32, i32) {
    %c0_i32 = arith.constant 0 : i32
    %c0_i32_0 = arith.constant 0 : i32
    %c0_i32_1 = arith.constant 0 : i32
    return %c0_i32, %c0_i32_0 : i32, i32
  }
  func.func @transform_2(%arg0: i32) -> (i32, i32) {
    %c0_i32 = arith.constant 0 : i32
    %c0_i32_0 = arith.constant 0 : i32
    %c0_i32_1 = arith.constant 0 : i32
    return %c0_i32, %c0_i32_0 : i32, i32
  }
  func.func @transform_3(%arg0: i32) -> (i32, i32) {
    %c0_i32 = arith.constant 0 : i32
    %c0_i32_0 = arith.constant 0 : i32
    %c0_i32_1 = arith.constant 0 : i32
    return %c0_i32, %c0_i32_0 : i32, i32
  }
  func.func @transform_4(%arg0: i32) -> (i32, i32, i32) {
    %c0_i32 = arith.constant 0 : i32
    %c0_i32_0 = arith.constant 0 : i32
    %c0_i32_1 = arith.constant 0 : i32
    return %arg0, %c0_i32, %c0_i32_0 : i32, i32, i32
  }
}

</mosaic_0001>

<bundles_post_ra>
// kernel: tpu_custom_call.1
= control target key start
LH: loop header
LB: loop body
LE: loop exit
PB: predicated region body
PF: predicated region fallthrough
CT: control target
= control target key end

     0   :  { %9 = vsyncpa [#allocation3], 0  ;;  %s2742_s0 = inlined_call_operand.vmem [shape: bf16[2,32,64], index: 0, kind: input, shape index: {}]   ;;  %s2743_s1 = inlined_call_operand.vmem [shape: bf16[384,32], index: 1, kind: input, shape index: {}]   ;;  %s2744_s2 = inlined_call_operand.vmem [shape: bf16[32,128], index: 2, kind: input, shape index: {}]   ;;  %s2745_s3 = inlined_call_operand.vmem [shape: f32[32,1], index: 3, kind: input, shape index: {}]   ;;  %s2746_s4 = inlined_call_operand.hbm [shape: f32[2,32,64], index: 4, kind: output, shape index: {}]  }
   0x1   :  { %11 = vsyncpa [#allocation3 + $0x1], 0  ;;  %s2350_s15 = smov 0   ;;  %s2352_s16 = smov 0  }
   0x2   :  { %s2354_s17 = smov 0   ;;  %s2356_s18 = smov 0  }
   0x3 LB: > { %s2371_s19 = sadd.s32 4294967295, %s2319_s18   ;;  %s1773_s20 = sadd.s32 4294967294, %s2319_s18   ;;  %s2319_s18 = sphi %s2356_s18, %s2752_s18   ;;  %s2315_s17 = sphi %s2354_s17, %s2751_s17   ;;  %s2311_s16 = sphi %s2352_s16, %s2750_s16   ;;  %s2307_s15 = sphi %s2350_s15, %s2749_s15  }
   0x4   : > { %s2375_s21 = sadd.s32 1, %s2319_s18   ;;  %s113_s22 = sadd.s32 1, %s2315_s17 }
   0x5   : > { %s110_s23 = ssub.s32 %s2319_s18, %s2375_s21  ;;  %p123_p0 = scmp.ne.s32.totalorder %s2315_s17, %s2311_s16 }
   0x6   : > { %p111_p1 = scmp.eq.s32.totalorder %s110_s23, 0  ;;  %p124_p2 = scmp.eq.s32.totalorder %s2371_s19, 1 }
   0x7   : > { %p129_p3 = scmp.ne.s32.totalorder %s2311_s16, %s2307_s15  ;;  %p130_p4 = scmp.eq.s32.totalorder %s1773_s20, 1 }
   0x8   : > { %s2386_s24 = scalar_select %p111_p1, %s2315_s17, %s113_s22  }
   0x9   : > { %p2388_p5 = por %p124_p2, %p123_p0  ;;  %p2392_p6 = por %p130_p4, %p129_p3 }
   0xa   : > { %p1776_p7 = scmp.ge.s32.totalorder %s2319_s18, 1  ;;  %p165_p8 = scmp.lt.s32.totalorder %s2319_s18, 3 }
   0xc   : > { %p166_p9 = pnand %p1776_p7, %p165_p8 }
   0xd   : > { %p191_p10 = scmp.lt.s32.totalorder (!%p166_p9), %s2371_s19, 1  ;;  %s188_s20 = sand.u32 (!%p166_p9), 1, %s2311_s16  }
   0xe   : > { %169 = sbr.rel (%p166_p9) target bundleno = 1916 (0x77c), region = 36  ;;  %s1777_s22 = sshll.u32 (!%p166_p9), %s188_s20, 5 }
   0xf   : > { %s190_s23 = scalar_lea.vmem (!%p166_p9), [#allocation2], %s1777_s22  ;;  %s1862_s28 = sshll.u32 (!%p166_p9), %s2371_s19, 9 }
  0x10   : > { %s1711_s27 = sshll.u32 (!%p166_p9), %s190_s23, 4  ;;  %s2698_s5 = scalar_lea.hbm (!%p166_p9), %s2746_s4, %s1862_s28  ;;  %s2693_s27 = int_to_ptr.vmem [resolvable:$true] %s1711_s27 }
  0x11   : > { %s2259_s6 = scalar_lea.vmem (!%p166_p9), %s2693_s27, 512 }
  0x12   : > { %p2260_p11 = scmp.ne.s32.totalorder (!%p166_p9), %s2693_s27, %s2259_s6 }
  0x13   : > { %v2161_v0 = vld [vmem:[%s2743_s1] sm:$0xff]   ;;  %vm389_vm0 = vcmask 261120   ;;  %s192_s29 = scalar_select %p191_p10, %s2371_s19, 1  ;;  %v2162_v3 = vld [vmem:[%s2743_s1 + $0x8] sm:$0xff]   ;;  %v2163_v4 = vld [vmem:[%s2743_s1 + $0x10] sm:$0xff]   ;;  %vm804_vm1 = vcmask 523264  }
  0x14   : > { %1951 = vmatprep.mubr.msk.bf16.mxu0 %vm389_vm0, %v2161_v0  ;;  %v2164_v5 = vld [vmem:[%s2743_s1 + $0x18] sm:$0xff]   ;;  %v2165_v6 = vld [vmem:[%s2743_s1 + $0x20] sm:$0xff]   ;;  %v2166_v7 = vld [vmem:[%s2743_s1 + $0x28] sm:$0xff]   ;;  %s2702_s19 = scalar_lea.sflag [#allocation3], %s188_s20  ;;  %p2261_p12 = pnand %p2260_p11, %p2388_p5 }
  0x15   : > { %s1861_s30 = sshll.u32 %s192_s29, 4  ;;  %v2167_v8 = vld [vmem:[%s2743_s1 + $0x30] sm:$0xff]   ;;  %v2168_v9 = vld [vmem:[%s2743_s1 + $0x38] sm:$0xff]   ;;  %v2169_v10 = vld [vmem:[%s2743_s1 + $0x40] sm:$0xff]  }
  0x16   : > { %s195_s7 = scalar_lea.vmem %s2742_s0, %s1861_s30  ;;  %v2170_v11 = vld [vmem:[%s2743_s1 + $0x48] sm:$0xff]   ;;  %v2171_v12 = vld [vmem:[%s2743_s1 + $0x50] sm:$0xff]   ;;  %v2172_v13 = vld [vmem:[%s2743_s1 + $0x58] sm:$0xff]   ;;  %p2262_p13 = pneg %p2261_p12 }
  0x17   : > { %v2159_v1 = vld [vmem:[%s195_s7 + $0x8] sm:$0xff]   ;;  %v2160_v2 = vld [vmem:[%s195_s7] sm:$0xff]   ;;  %v2175_v35 = vld [vmem:[%s2743_s1 + $0x70] sm:$0xff]   ;;  %s2322_s7 = smov [#allocation2]  }
  0x18   : > { %1947 = vmatprep.subr.bf16.mxu0 %v2159_v1  ;;  %v2173_v33 = vld [vmem:[%s2743_s1 + $0x60] sm:$0xff]   ;;  %v2174_v34 = vld [vmem:[%s2743_s1 + $0x68] sm:$0xff]   ;;  %v2176_v41 = vld [vmem:[%s2743_s1 + $0x78] sm:$0xff]   ;;  %s2263_s8 = sshll.u32 %s2322_s7, 4  ;;  %s2264_s8 = int_to_ptr.vmem [resolvable:$false] %s2263_s8 }
  0x19   : > { %1948 = vmatpush3.bf16.msra.mxu0 %v2159_v1  ;;  %v2177_v43 = vld [vmem:[%s2743_s1 + $0x80] sm:$0xff]   ;;  %v2178_v48 = vld [vmem:[%s2743_s1 + $0x88] sm:$0xff]   ;;  %s2265_s9 = scalar_lea.vmem %s2264_s8, 1024  ;;  %p2266_p0 = scmp.lt.s32.totalorder %s2693_s27, %s2264_s8 }
  0x1a   : > { %1949 = vmatprep.subr.bf16.mxu0 %v2160_v2  ;;  %p2267_p1 = scmp.lt.s32.totalorder %s2265_s9, %s2259_s6 }
  0x1c   : > { %p2268_p2 = por %p2267_p1, %p2266_p0 }
  0x1d   : > { %1950 = vmatpush3.bf16.msra.mxu0 %v2160_v2 }
  0x1e   : > { %p2269_p3 = pnand %p2268_p2, %p2262_p13 }
  0x20   : > { %1952 = vmatmul.mubr.msk.bf16.vlgmr.msra.gmra.mxu0 %vm389_vm0, %v2162_v3 }
  0x21   : > { %1955 = vmatprep.mubr.msk.bf16.mxu0 %vm389_vm0, %v2163_v4 }
  0x28   : > { %1956 = vmatmul.mubr.msk.bf16.gmra.mxu0 %vm389_vm0, %v2164_v5 }
  0x29   : > { %1959 = vmatprep.mubr.msk.bf16.mxu0 %vm389_vm0, %v2165_v6 }
  0x30   : > { %1960 = vmatmul.mubr.msk.bf16.gmra.mxu0 %vm389_vm0, %v2166_v7 }
  0x31   : > { %1963 = vmatprep.mubr.msk.bf16.mxu0 %vm389_vm0, %v2167_v8 }
  0x38   : > { %1964 = vmatmul.mubr.msk.bf16.gmra.mxu0 %vm389_vm0, %v2168_v9 }
  0x39   : > { %1967 = vmatprep.mubr.msk.bf16.mxu0 %vm389_vm0, %v2169_v10 }
  0x40   : > { %1968 = vmatmul.mubr.msk.bf16.gmra.mxu0 %vm389_vm0, %v2170_v11 }
  0x41   : > { %1971 = vmatprep.mubr.msk.bf16.mxu0 %vm389_vm0, %v2171_v12 }
  0x48   : > { %1972 = vmatmul.mubr.msk.bf16.gmra.mxu0 %vm389_vm0, %v2172_v13 }
  0x49   : > { %1975 = vmatprep.mubr.msk.bf16.mxu0 %vm389_vm0, %v2173_v33 }
  0x50   : > { %1976 = vmatmul.mubr.msk.bf16.gmra.mxu0 %vm389_vm0, %v2174_v34 }
  0x51   : > { %1979 = vmatprep.mubr.msk.bf16.mxu0 %vm389_vm0, %v2175_v35 }
  0x58   : > { %1980 = vmatmul.mubr.msk.bf16.gmra.mxu0 %vm389_vm0, %v2176_v41 }
  0x59   : > { %1983 = vmatprep.mubr.msk.bf16.mxu0 %vm389_vm0, %v2177_v43 }
  0x60   : > { %1984 = vmatmul.mubr.msk.bf16.gmra.mxu0 %vm389_vm0, %v2178_v48 }
  0xe0   : > { %v1953_v14 = vpop.f32.mrf.mxu0 }
  0xe2   : > { %v496_v15 = vpop.f32.mrf.mxu0 }
  0xe4   : > { %v1954_v16 = vpop.f32.mrf.mxu0 }
  0xe5   : > { %v688_v17 = vpack.c.bf16 %v1954_v16, %v1953_v14  ;;  %v2179_v14 = vld [vmem:[%s2743_s1 + $0x90] sm:$0xff]  }
  0xe6   : > { %v499_v18 = vpop.f32.mrf.mxu0  ;;  %1987 = vmatprep.mubr.msk.bf16.mxu0 %vm389_vm0, %v2179_v14 }
  0xe7   : > { %v687_v19 = vpack.c.bf16 %v499_v18, %v496_v15  ;;  %1999 = vmatprep.subr.bf16.mxu1 %v688_v17  ;;  %v2180_v15 = vld [vmem:[%s2743_s1 + $0x98] sm:$0xff]  }
  0xe8   : > { %v1957_v20 = vpop.f32.mrf.mxu0  ;;  %2000 = vmatpush3.bf16.msra.mxu1 %v688_v17  ;;  %1988 = vmatmul.mubr.msk.bf16.gmra.mxu0 %vm389_vm0, %v2180_v15 }
  0xe9   : > { %2001 = vmatprep.subr.bf16.mxu1 %v687_v19 }
  0xea   : > { %v512_v21 = vpop.f32.mrf.mxu0 }
  0xec   : > { %v1958_v22 = vpop.f32.mrf.mxu0  ;;  %2002 = vmatpush3.bf16.msra.mxu1 %v687_v19 }
  0xed   : > { %v2451_v23 = vpack.c.bf16 %v1958_v22, %v1957_v20 }
  0xee   : > { %v515_v24 = vpop.f32.mrf.mxu0 }
  0xef   : > { %v2453_v25 = vpack.c.bf16 %v515_v24, %v512_v21 }
  0xf0   : > { %v1961_v26 = vpop.f32.mrf.mxu0 }
  0xf2   : > { %v528_v27 = vpop.f32.mrf.mxu0 }
  0xf4   : > { %v1962_v28 = vpop.f32.mrf.mxu0 }
  0xf5   : > { %v2455_v29 = vpack.c.bf16 %v1962_v28, %v1961_v26 }
  0xf6   : > { %v531_v30 = vpop.f32.mrf.mxu0 }
  0xf7   : > { %v2457_v31 = vpack.c.bf16 %v531_v30, %v528_v27 }
  0xf8   : > { %v1965_v32 = vpop.f32.mrf.mxu0 }
  0xfa   : > { %v544_v36 = vpop.f32.mrf.mxu0 }
  0xfc   : > { %v1966_v37 = vpop.f32.mrf.mxu0 }
  0xfd   : > { %v2471_v38 = vpack.c.bf16 %v1966_v37, %v1965_v32 }
  0xfe   : > { %v547_v39 = vpop.f32.mrf.mxu0 }
  0xff   : > { %v2473_v40 = vpack.c.bf16 %v547_v39, %v544_v36 }
 0x100   : > { %v1969_v42 = vpop.f32.mrf.mxu0 }
 0x102   : > { %v560_v44 = vpop.f32.mrf.mxu0 }
 0x104   : > { %v1970_v45 = vpop.f32.mrf.mxu0 }
 0x105   : > { %v696_v49 = vpack.c.bf16 %v1970_v45, %v1969_v42 }
 0x106   : > { %v563_v46 = vpop.f32.mrf.mxu0 }
 0x107   : > { %v695_v47 = vpack.c.bf16 %v563_v46, %v560_v44 }
 0x108   : > { %v1973_v50 = vpop.f32.mrf.mxu0 }
 0x109   : > { %711 = vxpose.xlu0.c.b16.start [1/2] (short) (narrow) %v695_v47, 64 }
 0x10a   : > { %v576_v51 = vpop.f32.mrf.mxu0 }
 0x10c   : > { %v1974_v52 = vpop.f32.mrf.mxu0 }
 0x10d   : > { %712 = vxpose.xlu0.c.b16.end [2/2] (short) (narrow) %v696_v49, 64  ;;  %v698_v55 = vpack.c.bf16 %v1974_v52, %v1973_v50 }
 0x10e   : > { %v579_v53 = vpop.f32.mrf.mxu0 }
 0x10f   : > { %v697_v54 = vpack.c.bf16 %v579_v53, %v576_v51 }
 0x110   : > { %v1977_v60 = vpop.f32.mrf.mxu0 }
 0x111   : > { %937 = vxpose.xlu1.c.b16.start [1/2] (short) (narrow) %v697_v54, 64 }
 0x112   : > { %v592_v61 = vpop.f32.mrf.mxu0 }
 0x114   : > { %v1978_v62 = vpop.f32.mrf.mxu0 }
 0x115   : > { %938 = vxpose.xlu1.c.b16.end [2/2] (short) (narrow) %v698_v55, 64  ;;  %v700_v3 = vpack.c.bf16 %v1978_v62, %v1977_v60 }
 0x116   : > { %v595_v63 = vpop.f32.mrf.mxu0 }
 0x117   : > { %v699_v0 = vpack.c.bf16 %v595_v63, %v592_v61 }
 0x118   : > { %v1981_v1 = vpop.f32.mrf.mxu0 }
 0x119   : > { %1162 = vxpose.xlu0.c.b16.start [1/2] (short) (narrow) %v699_v0, 64 }
 0x11a   : > { %v608_v2 = vpop.f32.mrf.mxu0 }
 0x11c   : > { %v1982_v4 = vpop.f32.mrf.mxu0 }
 0x11d   : > { %1163 = vxpose.xlu0.c.b16.end [2/2] (short) (narrow) %v700_v3, 64  ;;  %v702_v7 = vpack.c.bf16 %v1982_v4, %v1981_v1 }
 0x11e   : > { %v611_v5 = vpop.f32.mrf.mxu0 }
 0x11f   : > { %v701_v6 = vpack.c.bf16 %v611_v5, %v608_v2 }
 0x120   : > { %v2491_v8 = vpop.f32.mrf.mxu0 }
 0x121   : > { %1387 = vxpose.xlu1.c.b16.start [1/2] (short) (narrow) %v701_v6, 64 }
 0x122   : > { %v624_v9 = vpop.f32.mrf.mxu0 }
 0x124   : > { %v2493_v10 = vpop.f32.mrf.mxu0 }
 0x125   : > { %1388 = vxpose.xlu1.c.b16.end [2/2] (short) (narrow) %v702_v7, 64  ;;  %v704_v12 = vpack.c.bf16 %v2493_v10, %v2491_v8 }
 0x126   : > { %v627_v11 = vpop.f32.mrf.mxu0 }
 0x127   : > { %v703_v13 = vpack.c.bf16 %v627_v11, %v624_v9 }
 0x16b   : > { %v719_v56 = vpop.trf.xlu0 }
 0x16c   : > { %2003 = vmatprep.mubr.msk.bf16.mxu1 %vm389_vm0, %v719_v56 }
 0x16f   : > { %v720_v57 = vpop.trf.xlu0 }
 0x170   : > { %2004 = vmatmul.mubr.msk.bf16.vlgmr.msra.gmra.mxu1 %vm389_vm0, %v720_v57 }
 0x173   : > { %v721_v58 = vpop.trf.xlu0 }
 0x174   : > { %2007 = vmatprep.mubr.msk.bf16.mxu1 %vm389_vm0, %v721_v58 }
 0x177   : > { %v722_v59 = vpop.trf.xlu0 }
 0x178   : > { %2008 = vmatmul.mubr.msk.bf16.gmra.mxu1 %vm389_vm0, %v722_v59 }
 0x179   : > { %2019 = vmatprep.mubr.msk.bf16.mxu1 %vm804_vm1, %v703_v13 }
 0x1a8   : > { %v2534_v8 = vpop.f32.mrf.mxu0 }
 0x1aa   : > { %v640_v10 = vpop.f32.mrf.mxu0 }
 0x230   : > { %v2005_v16 = vpop.f32.mrf.mxu1 }
 0x231   : > { %v807_v33 = vsel %vm804_vm1, %v2005_v16, -inf }
 0x232   : > { %v773_v17 = vpop.f32.mrf.mxu1 }
 0x233   : > { %v805_v34 = vsel %vm804_vm1, %v773_v17, -inf }
 0x234   : > { %v2006_v18 = vpop.f32.mrf.mxu1 }
 0x235   : > { %v808_v24 = vsel %vm804_vm1, %v2006_v18, -inf }
 0x236   : > { %v776_v19 = vpop.f32.mrf.mxu1 }
 0x237   : > { %v806_v35 = vsel %vm804_vm1, %v776_v19, -inf }
 0x238   : > { %v2009_v20 = vpop.f32.mrf.mxu1 }
 0x239   : > { %v813_v26 = vsel %vm804_vm1, %v2009_v20, -inf }
 0x23a   : > { %v789_v21 = vpop.f32.mrf.mxu1  ;;  %v814_v37 = vmax.f32 %v807_v33, %v813_v26 }
 0x23b   : > { %v809_v27 = vsel %vm804_vm1, %v789_v21, -inf }
 0x23c   : > { %v2010_v22 = vpop.f32.mrf.mxu1  ;;  %v810_v39 = vmax.f32 %v805_v34, %v809_v27 }
 0x23d   : > { %v815_v28 = vsel %vm804_vm1, %v2010_v22, -inf }
 0x23e   : > { %v816_v30 = vmax.f32 %v808_v24, %v815_v28  ;;  %v792_v32 = vpop.f32.mrf.mxu1 }
 0x23f   : > { %v811_v36 = vsel %vm804_vm1, %v792_v32, -inf }
 0x240   : > { %v812_v41 = vmax.f32 %v806_v35, %v811_v36  ;;  %v818_v42 = vmax.f32 %v814_v37, %v816_v30  ;;  %v945_v37 = vpop.trf.xlu1 }
 0x242   : > { %v817_v43 = vmax.f32 %v810_v39, %v812_v41 }
 0x244   : > { %v819_v44 = vmax.f32 %v817_v43, %v818_v42  ;;  %v946_v39 = vpop.trf.xlu1 }
 0x246   : > { %v820_v45 = vrot.slane %v819_v44, 4 }
 0x248   : > { %v821_v46 = vmax.f32 %v819_v44, %v820_v45  ;;  %v947_v41 = vpop.trf.xlu1 }
 0x24a   : > { %v822_v47 = vrot.slane %v821_v46, 2 }
 0x24c   : > { %v823_v48 = vmax.f32 %v821_v46, %v822_v47  ;;  %v948_v42 = vpop.trf.xlu1  ;;  %v2181_v47 = vld [vmem:[%s2743_s1 + $0xa0] sm:$0xff]  }
 0x24d   : > { %1991 = vmatprep.mubr.msk.bf16.mxu0 %vm389_vm0, %v2181_v47 }
 0x24e   : > { %v824_v49 = vrot.slane %v823_v48, 1 }
 0x250   : > { %v825_v50 = vmax.f32 %v823_v48, %v824_v49  ;;  %v2182_v48 = vld [vmem:[%s2743_s1 + $0xa8] sm:$0xff]  }
 0x251   : > { %1992 = vmatmul.mubr.msk.bf16.gmra.mxu0 %vm389_vm0, %v2182_v48 }
 0x252   : > { %v826_v51 = vsub.f32 %v773_v17, %v825_v50  ;;  %v827_v52 = vsub.f32 %v776_v19, %v825_v50  ;;  %v828_v53 = vsub.f32 %v2005_v16, %v825_v50  ;;  %v829_v54 = vsub.f32 %v2006_v18, %v825_v50 }
 0x253   : > { %v830_v55 = vsub.f32 %v789_v21, %v825_v50  ;;  %v831_v56 = vsub.f32 %v792_v32, %v825_v50  ;;  %v832_v60 = vsub.f32 %v2009_v20, %v825_v50  ;;  %v833_v62 = vsub.f32 %v2010_v22, %v825_v50 }
 0x254   : > { %v834_v57 = vmul.f32 1.442695, %v826_v51  ;;  %v836_v58 = vmul.f32 1.442695, %v827_v52  ;;  %v838_v59 = vmul.f32 1.442695, %v828_v53 }
 0x255   : > { %v840_v61 = vmul.f32 1.442695, %v829_v54  ;;  %v842_v63 = vmul.f32 1.442695, %v830_v55  ;;  %v844_v0 = vmul.f32 1.442695, %v831_v56 }
 0x256   : > { %2187 = vpow2.f32 %v834_v57  ;;  %v846_v1 = vmul.f32 1.442695, %v832_v60  ;;  %v848_v2 = vmul.f32 1.442695, %v833_v62 }
 0x257   : > { %2189 = vpow2.f32 %v836_v58 }
 0x258   : > { %2191 = vpow2.f32 %v838_v59 }
 0x259   : > { %2193 = vpow2.f32 %v840_v61 }
 0x25a   : > { %2195 = vpow2.f32 %v842_v63 }
 0x25b   : > { %2197 = vpow2.f32 %v844_v0 }
 0x25c   : > { %2199 = vpow2.f32 %v846_v1 }
 0x25d   : > { %2201 = vpow2.f32 %v848_v2 }
 0x263   : > { %v2188_v3 = vpop.eup %2187 }
 0x264   : > { %v2190_v4 = vpop.eup %2189  ;;  %v850_v5 = vsel %vm804_vm1, %v2188_v3, 0.0 }
 0x265   : > { %v2192_v6 = vpop.eup %2191  ;;  %v851_v7 = vsel %vm804_vm1, %v2190_v4, 0.0  ;;  %v871_v36 = vpack.c.bf16 %v2190_v4, %v2188_v3 }
 0x266   : > { %v2194_v9 = vpop.eup %2193  ;;  %v852_v11 = vadd.f32 %v851_v7, %v850_v5  ;;  %v853_v14 = vsel %vm804_vm1, %v2192_v6, 0.0 }
 0x267   : > { %v2196_v13 = vpop.eup %2195  ;;  %v855_v18 = vsel %vm804_vm1, %v2194_v9, 0.0  ;;  %v872_v34 = vpack.c.bf16 %v2194_v9, %v2192_v6 }
 0x268   : > { %v2198_v15 = vpop.eup %2197  ;;  %v854_v16 = vadd.f32 %v853_v14, %v852_v11  ;;  %v857_v21 = vsel %vm804_vm1, %v2196_v13, 0.0 }
 0x269   : > { %v2200_v17 = vpop.eup %2199  ;;  %v859_v26 = vsel %vm804_vm1, %v2198_v15, 0.0  ;;  %v873_v27 = vpack.c.bf16 %v2198_v15, %v2196_v13 }
 0x26a   : > { %v2202_v19 = vpop.eup %2201  ;;  %v856_v20 = vadd.f32 %v855_v18, %v854_v16  ;;  %v861_v30 = vsel %vm804_vm1, %v2200_v17, 0.0 }
 0x26b   : > { %v874_v22 = vpack.c.bf16 %v2202_v19, %v2200_v17  ;;  %v863_v33 = vsel %vm804_vm1, %v2202_v19, 0.0 }
 0x26c   : > { %v858_v24 = vadd.f32 %v857_v21, %v856_v20 }
 0x26d   : > { %2011 = vmatprep.subr.bf16.mxu1 %v874_v22 }
 0x26e   : > { %v860_v28 = vadd.f32 %v859_v26, %v858_v24  ;;  %2012 = vmatpush3.bf16.msra.mxu1 %v874_v22 }
 0x26f   : > { %2013 = vmatprep.subr.bf16.mxu1 %v873_v27 }
 0x270   : > { %v862_v32 = vadd.f32 %v861_v30, %v860_v28 }
 0x272   : > { %v864_v35 = vadd.f32 %v863_v33, %v862_v32  ;;  %2014 = vmatpush3.bf16.msra.mxu1 %v873_v27 }
 0x273   : > { %2015 = vmatprep.subr.bf16.mxu1 %v872_v34 }
 0x276   : > { %2016 = vmatpush3.bf16.msra.mxu1 %v872_v34 }
 0x277   : > { %2017 = vmatprep.subr.bf16.mxu1 %v871_v36 }
 0x27a   : > { %2018 = vmatpush3.bf16.msra.mxu1 %v871_v36 }
 0x27b   : > { %2023 = vmatprep.subr.bf16.mxu1 %v2451_v23 }
 0x27d   : > { %2020 = vmatmul.mubr.msk.bf16.vlgmr.msra.gmra.mxu1 %vm804_vm1, %v704_v12  ;;  %v2536_v12 = vpop.f32.mrf.mxu0 }
 0x27e   : > { %2024 = vmatpush3.bf16.msra.mxu1 %v2451_v23  ;;  %2027 = vmatprep.mubr.msk.bf16.mxu1 %vm389_vm0, %v945_v37  ;;  %v706_v43 = vpack.c.bf16 %v2536_v12, %v2534_v8 }
 0x27f   : > { %2025 = vmatprep.subr.bf16.mxu1 %v2453_v25  ;;  %v643_v23 = vpop.f32.mrf.mxu0 }
 0x280   : > { %v705_v44 = vpack.c.bf16 %v643_v23, %v640_v10 }
 0x282   : > { %2026 = vmatpush3.bf16.msra.mxu1 %v2453_v25  ;;  %v865_v25 = vrot.slane %v864_v35, 4 }
 0x284   : > { %v866_v45 = vadd.f32 %v865_v25, %v864_v35 }
 0x285   : > { %2028 = vmatmul.mubr.msk.bf16.vlgmr.msra.gmra.mxu1 %vm389_vm0, %v946_v39 }
 0x286   : > { %2031 = vmatprep.mubr.msk.bf16.mxu1 %vm389_vm0, %v947_v41  ;;  %v867_v46 = vrot.slane %v866_v45, 2 }
 0x288   : > { %v868_v49 = vadd.f32 %v867_v46, %v866_v45 }
 0x28a   : > { %v869_v50 = vrot.slane %v868_v49, 1 }
 0x28c   : > { %v870_v51 = vadd.f32 %v869_v50, %v868_v49 }
 0x28d   : > { %2032 = vmatmul.mubr.msk.bf16.gmra.mxu1 %vm389_vm0, %v948_v42 }
 0x28e   : > { %2043 = vmatprep.mubr.msk.bf16.mxu1 %vm804_vm1, %v705_v44  ;;  %2203 = vrcp.f32 %v870_v51 }
 0x29b   : > { %v2204_v52 = vpop.eup %2203 }
 0x311   : > { %v2581_v8 = vpop.f32.mrf.mxu0 }
 0x313   : > { %v656_v12 = vpop.f32.mrf.mxu0 }
 0x33d   : > { %v2021_v53 = vpop.f32.mrf.mxu1 }
 0x33e   : > { %v933_v54 = vmul.f32 %v2204_v52, %v2021_v53 }
 0x33f   : > { %v915_v55 = vpop.f32.mrf.mxu1 }
 0x340   : > { %v931_v56 = vmul.f32 %v2204_v52, %v915_v55 }
 0x341   : > { %v2022_v57 = vpop.f32.mrf.mxu1 }
 0x342   : > { %v934_v58 = vmul.f32 %v2204_v52, %v2022_v57 }
 0x343   : > { %v918_v59 = vpop.f32.mrf.mxu1 }
 0x344   : > { %v2549_v60 = vpack.c.bf16 %v934_v58, %v933_v54  ;;  %v932_v61 = vmul.f32 %v2204_v52, %v918_v59 }
 0x345   : > { %v2029_v62 = vpop.f32.mrf.mxu1 }
 0x346   : > { %v2551_v63 = vpack.c.bf16 %v932_v61, %v931_v56  ;;  %v1032_v15 = vsel %vm804_vm1, %v2029_v62, -inf }
 0x347   : > { %v999_v0 = vpop.f32.mrf.mxu1 }
 0x348   : > { %v1030_v16 = vsel %vm804_vm1, %v999_v0, -inf }
 0x349   : > { %v2030_v1 = vpop.f32.mrf.mxu1 }
 0x34a   : > { %v1033_v6 = vsel %vm804_vm1, %v2030_v1, -inf }
 0x34b   : > { %v1002_v2 = vpop.f32.mrf.mxu1 }
 0x34c   : > { %v1031_v17 = vsel %vm804_vm1, %v1002_v2, -inf }
 0x34d   : > { %v2033_v3 = vpop.f32.mrf.mxu1 }
 0x34e   : > { %v1038_v7 = vsel %vm804_vm1, %v2033_v3, -inf }
 0x34f   : > { %v1015_v4 = vpop.f32.mrf.mxu1  ;;  %v1039_v19 = vmax.f32 %v1032_v15, %v1038_v7 }
 0x350   : > { %v1034_v9 = vsel %vm804_vm1, %v1015_v4, -inf }
 0x351   : > { %v2034_v5 = vpop.f32.mrf.mxu1  ;;  %v1035_v20 = vmax.f32 %v1030_v16, %v1034_v9 }
 0x352   : > { %v1040_v11 = vsel %vm804_vm1, %v2034_v5, -inf }
 0x353   : > { %v1041_v13 = vmax.f32 %v1033_v6, %v1040_v11  ;;  %v1018_v14 = vpop.f32.mrf.mxu1 }
 0x354   : > { %v1036_v18 = vsel %vm804_vm1, %v1018_v14, -inf }
 0x355   : > { %v1037_v21 = vmax.f32 %v1031_v17, %v1036_v18  ;;  %v1043_v22 = vmax.f32 %v1039_v19, %v1041_v13  ;;  %v1170_v19 = vpop.trf.xlu0 }
 0x357   : > { %v1042_v24 = vmax.f32 %v1035_v20, %v1037_v21 }
 0x359   : > { %v1044_v26 = vmax.f32 %v1042_v24, %v1043_v22  ;;  %v1171_v20 = vpop.trf.xlu0 }
 0x35b   : > { %v1045_v27 = vrot.slane %v1044_v26, 4 }
 0x35d   : > { %v1046_v28 = vmax.f32 %v1044_v26, %v1045_v27  ;;  %v1172_v21 = vpop.trf.xlu0 }
 0x35f   : > { %v1047_v30 = vrot.slane %v1046_v28, 2 }
 0x361   : > { %v1048_v32 = vmax.f32 %v1046_v28, %v1047_v30  ;;  %v1173_v22 = vpop.trf.xlu0  ;;  %v2183_v30 = vld [vmem:[%s2743_s1 + $0xb0] sm:$0xff]  }
 0x362   : > { %1995 = vmatprep.mubr.msk.bf16.mxu0 %vm389_vm0, %v2183_v30 }
 0x363   : > { %v1049_v33 = vrot.slane %v1048_v32, 1 }
 0x365   : > { %v1050_v34 = vmax.f32 %v1048_v32, %v1049_v33  ;;  %v2184_v32 = vld [vmem:[%s2743_s1 + $0xb8] sm:$0xff]  }
 0x366   : > { %1996 = vmatmul.mubr.msk.bf16.gmra.mxu0 %vm389_vm0, %v2184_v32 }
 0x367   : > { %v1051_v35 = vsub.f32 %v999_v0, %v1050_v34  ;;  %v1052_v36 = vsub.f32 %v1002_v2, %v1050_v34  ;;  %v1053_v37 = vsub.f32 %v2029_v62, %v1050_v34  ;;  %v1054_v39 = vsub.f32 %v2030_v1, %v1050_v34 }
 0x368   : > { %v1055_v41 = vsub.f32 %v1015_v4, %v1050_v34  ;;  %v1056_v42 = vsub.f32 %v1018_v14, %v1050_v34  ;;  %v1057_v25 = vsub.f32 %v2033_v3, %v1050_v34  ;;  %v1058_v46 = vsub.f32 %v2034_v5, %v1050_v34 }
 0x369   : > { %v1059_v10 = vmul.f32 1.442695, %v1051_v35  ;;  %v1061_v23 = vmul.f32 1.442695, %v1052_v36  ;;  %v1063_v44 = vmul.f32 1.442695, %v1053_v37 }
 0x36a   : > { %v1065_v45 = vmul.f32 1.442695, %v1054_v39  ;;  %v1067_v47 = vmul.f32 1.442695, %v1055_v41  ;;  %v1069_v48 = vmul.f32 1.442695, %v1056_v42 }
 0x36b   : > { %2205 = vpow2.f32 %v1059_v10  ;;  %v1071_v49 = vmul.f32 1.442695, %v1057_v25  ;;  %v1073_v50 = vmul.f32 1.442695, %v1058_v46 }
 0x36c   : > { %2207 = vpow2.f32 %v1061_v23 }
 0x36d   : > { %2209 = vpow2.f32 %v1063_v44 }
 0x36e   : > { %2211 = vpow2.f32 %v1065_v45 }
 0x36f   : > { %2213 = vpow2.f32 %v1067_v47 }
 0x370   : > { %2215 = vpow2.f32 %v1069_v48 }
 0x371   : > { %2217 = vpow2.f32 %v1071_v49 }
 0x372   : > { %2219 = vpow2.f32 %v1073_v50 }
 0x378   : > { %v2206_v51 = vpop.eup %2205 }
 0x379   : > { %v2208_v52 = vpop.eup %2207  ;;  %v1075_v53 = vsel %vm804_vm1, %v2206_v51, 0.0 }
 0x37a   : > { %v2210_v54 = vpop.eup %2209  ;;  %v1076_v55 = vsel %vm804_vm1, %v2208_v52, 0.0  ;;  %v1096_v18 = vpack.c.bf16 %v2208_v52, %v2206_v51 }
 0x37b   : > { %v2212_v56 = vpop.eup %2211  ;;  %v1077_v57 = vadd.f32 %v1076_v55, %v1075_v53  ;;  %v1078_v59 = vsel %vm804_vm1, %v2210_v54, 0.0 }
 0x37c   : > { %v2214_v58 = vpop.eup %2213  ;;  %v1080_v1 = vsel %vm804_vm1, %v2212_v56, 0.0  ;;  %v1097_v16 = vpack.c.bf16 %v2212_v56, %v2210_v54 }
 0x37d   : > { %v2216_v61 = vpop.eup %2215  ;;  %v1079_v62 = vadd.f32 %v1078_v59, %v1077_v57  ;;  %v1082_v4 = vsel %vm804_vm1, %v2214_v58, 0.0 }
 0x37e   : > { %v2218_v0 = vpop.eup %2217  ;;  %v1084_v7 = vsel %vm804_vm1, %v2216_v61, 0.0  ;;  %v1098_v9 = vpack.c.bf16 %v2216_v61, %v2214_v58 }
 0x37f   : > { %v2220_v2 = vpop.eup %2219  ;;  %v1081_v3 = vadd.f32 %v1080_v1, %v1079_v62  ;;  %v1086_v13 = vsel %vm804_vm1, %v2218_v0, 0.0 }
 0x380   : > { %v1099_v5 = vpack.c.bf16 %v2220_v2, %v2218_v0  ;;  %v1088_v15 = vsel %vm804_vm1, %v2220_v2, 0.0 }
 0x381   : > { %v1083_v6 = vadd.f32 %v1082_v4, %v1081_v3 }
 0x382   : > { %2035 = vmatprep.subr.bf16.mxu1 %v1099_v5 }
 0x383   : > { %v1085_v11 = vadd.f32 %v1084_v7, %v1083_v6  ;;  %2036 = vmatpush3.bf16.msra.mxu1 %v1099_v5 }
 0x384   : > { %2037 = vmatprep.subr.bf16.mxu1 %v1098_v9 }
 0x385   : > { %v1087_v14 = vadd.f32 %v1086_v13, %v1085_v11 }
 0x387   : > { %v1089_v17 = vadd.f32 %v1088_v15, %v1087_v14  ;;  %2038 = vmatpush3.bf16.msra.mxu1 %v1098_v9 }
 0x388   : > { %2039 = vmatprep.subr.bf16.mxu1 %v1097_v16 }
 0x38b   : > { %2040 = vmatpush3.bf16.msra.mxu1 %v1097_v16 }
 0x38c   : > { %2041 = vmatprep.subr.bf16.mxu1 %v1096_v18 }
 0x38f   : > { %2042 = vmatpush3.bf16.msra.mxu1 %v1096_v18 }
 0x390   : > { %2047 = vmatprep.subr.bf16.mxu1 %v2455_v29 }
 0x392   : > { %2044 = vmatmul.mubr.msk.bf16.vlgmr.msra.gmra.mxu1 %vm804_vm1, %v706_v43  ;;  %v2583_v43 = vpop.f32.mrf.mxu0 }
 0x393   : > { %2048 = vmatpush3.bf16.msra.mxu1 %v2455_v29  ;;  %2051 = vmatprep.mubr.msk.bf16.mxu1 %vm389_vm0, %v1170_v19  ;;  %v708_v24 = vpack.c.bf16 %v2583_v43, %v2581_v8 }
 0x394   : > { %2049 = vmatprep.subr.bf16.mxu1 %v2457_v31  ;;  %v659_v29 = vpop.f32.mrf.mxu0 }
 0x395   : > { %v707_v26 = vpack.c.bf16 %v659_v29, %v656_v12 }
 0x397   : > { %2050 = vmatpush3.bf16.msra.mxu1 %v2457_v31  ;;  %v1090_v31 = vrot.slane %v1089_v17, 4 }
 0x399   : > { %v1091_v27 = vadd.f32 %v1090_v31, %v1089_v17 }
 0x39a   : > { %2052 = vmatmul.mubr.msk.bf16.vlgmr.msra.gmra.mxu1 %vm389_vm0, %v1171_v20 }
 0x39b   : > { %2055 = vmatprep.mubr.msk.bf16.mxu1 %vm389_vm0, %v1172_v21  ;;  %v1092_v28 = vrot.slane %v1091_v27, 2 }
 0x39d   : > { %v1093_v33 = vadd.f32 %v1092_v28, %v1091_v27 }
 0x39f   : > { %v1094_v34 = vrot.slane %v1093_v33, 1 }
 0x3a1   : > { %v1095_v35 = vadd.f32 %v1094_v34, %v1093_v33 }
 0x3a2   : > { %2056 = vmatmul.mubr.msk.bf16.gmra.mxu1 %vm389_vm0, %v1173_v22 }
 0x3a3   : > { %2067 = vmatprep.mubr.msk.bf16.mxu1 %vm804_vm1, %v707_v26  ;;  %2221 = vrcp.f32 %v1095_v35 }
 0x3b0   : > { %v2222_v36 = vpop.eup %2221 }
 0x426   : > { %v2628_v8 = vpop.f32.mrf.mxu0 }
 0x428   : > { %v672_v43 = vpop.f32.mrf.mxu0 }
 0x452   : > { %v2045_v37 = vpop.f32.mrf.mxu1 }
 0x453   : > { %v1158_v39 = vmul.f32 %v2222_v36, %v2045_v37 }
 0x454   : > { %v1140_v41 = vpop.f32.mrf.mxu1 }
 0x455   : > { %v1156_v42 = vmul.f32 %v2222_v36, %v1140_v41 }
 0x456   : > { %v2046_v10 = vpop.f32.mrf.mxu1 }
 0x457   : > { %v1159_v23 = vmul.f32 %v2222_v36, %v2046_v10 }
 0x458   : > { %v1143_v44 = vpop.f32.mrf.mxu1 }
 0x459   : > { %v2596_v25 = vpack.c.bf16 %v1159_v23, %v1158_v39  ;;  %v1157_v45 = vmul.f32 %v2222_v36, %v1143_v44 }
 0x45a   : > { %v2053_v46 = vpop.f32.mrf.mxu1 }
 0x45b   : > { %v2598_v47 = vpack.c.bf16 %v1157_v45, %v1156_v42  ;;  %v1257_v61 = vsel %vm804_vm1, %v2053_v46, -inf }
 0x45c   : > { %v1224_v48 = vpop.f32.mrf.mxu1 }
 0x45d   : > { %v1255_v62 = vsel %vm804_vm1, %v1224_v48, -inf }
 0x45e   : > { %v2054_v49 = vpop.f32.mrf.mxu1 }
 0x45f   : > { %v1258_v54 = vsel %vm804_vm1, %v2054_v49, -inf }
 0x460   : > { %v1227_v50 = vpop.f32.mrf.mxu1 }
 0x461   : > { %v1256_v0 = vsel %vm804_vm1, %v1227_v50, -inf }
 0x462   : > { %v2057_v51 = vpop.f32.mrf.mxu1 }
 0x463   : > { %v1263_v55 = vsel %vm804_vm1, %v2057_v51, -inf }
 0x464   : > { %v1240_v52 = vpop.f32.mrf.mxu1  ;;  %v1264_v2 = vmax.f32 %v1257_v61, %v1263_v55 }
 0x465   : > { %v1259_v56 = vsel %vm804_vm1, %v1240_v52, -inf }
 0x466   : > { %v2058_v53 = vpop.f32.mrf.mxu1  ;;  %v1260_v3 = vmax.f32 %v1255_v62, %v1259_v56 }
 0x467   : > { %v1265_v57 = vsel %vm804_vm1, %v2058_v53, -inf }
 0x468   : > { %v1266_v58 = vmax.f32 %v1258_v54, %v1265_v57  ;;  %v1243_v59 = vpop.f32.mrf.mxu1 }
 0x469   : > { %v1261_v1 = vsel %vm804_vm1, %v1243_v59, -inf }
 0x46a   : > { %v1262_v4 = vmax.f32 %v1256_v0, %v1261_v1  ;;  %v1268_v5 = vmax.f32 %v1264_v2, %v1266_v58  ;;  %v1395_v2 = vpop.trf.xlu1 }
 0x46c   : > { %v1267_v6 = vmax.f32 %v1260_v3, %v1262_v4 }
 0x46e   : > { %v1269_v7 = vmax.f32 %v1267_v6, %v1268_v5  ;;  %v1396_v3 = vpop.trf.xlu1 }
 0x470   : > { %v1270_v9 = vrot.slane %v1269_v7, 4 }
 0x472   : > { %v1271_v11 = vmax.f32 %v1269_v7, %v1270_v9  ;;  %v1397_v4 = vpop.trf.xlu1 }
 0x474   : > { %v1272_v13 = vrot.slane %v1271_v11, 2 }
 0x476   : > { %v1273_v14 = vmax.f32 %v1271_v11, %v1272_v13  ;;  %v1398_v5 = vpop.trf.xlu1 }
 0x478   : > { %v1274_v15 = vrot.slane %v1273_v14, 1 }
 0x47a   : > { %v1275_v16 = vmax.f32 %v1273_v14, %v1274_v15 }
 0x47c   : > { %v1276_v17 = vsub.f32 %v1224_v48, %v1275_v16  ;;  %v1277_v18 = vsub.f32 %v1227_v50, %v1275_v16  ;;  %v1278_v19 = vsub.f32 %v2053_v46, %v1275_v16  ;;  %v1279_v20 = vsub.f32 %v2054_v49, %v1275_v16 }
 0x47d   : > { %v1280_v21 = vsub.f32 %v1240_v52, %v1275_v16  ;;  %v1281_v22 = vsub.f32 %v1243_v59, %v1275_v16  ;;  %v1282_v31 = vsub.f32 %v2057_v51, %v1275_v16  ;;  %v1283_v28 = vsub.f32 %v2058_v53, %v1275_v16 }
 0x47e   : > { %v1284_v12 = vmul.f32 1.442695, %v1276_v17  ;;  %v1286_v29 = vmul.f32 1.442695, %v1277_v18  ;;  %v1288_v26 = vmul.f32 1.442695, %v1278_v19 }
 0x47f   : > { %v1290_v27 = vmul.f32 1.442695, %v1279_v20  ;;  %v1292_v30 = vmul.f32 1.442695, %v1280_v21  ;;  %v1294_v32 = vmul.f32 1.442695, %v1281_v22 }
 0x480   : > { %2223 = vpow2.f32 %v1284_v12  ;;  %v1296_v33 = vmul.f32 1.442695, %v1282_v31  ;;  %v1298_v34 = vmul.f32 1.442695, %v1283_v28 }
 0x481   : > { %2225 = vpow2.f32 %v1286_v29 }
 0x482   : > { %2227 = vpow2.f32 %v1288_v26 }
 0x483   : > { %2229 = vpow2.f32 %v1290_v27 }
 0x484   : > { %2231 = vpow2.f32 %v1292_v30 }
 0x485   : > { %2233 = vpow2.f32 %v1294_v32 }
 0x486   : > { %2235 = vpow2.f32 %v1296_v33 }
 0x487   : > { %2237 = vpow2.f32 %v1298_v34 }
 0x48d   : > { %v2224_v35 = vpop.eup %2223 }
 0x48e   : > { %v2226_v36 = vpop.eup %2225  ;;  %v1300_v37 = vsel %vm804_vm1, %v2224_v35, 0.0 }
 0x48f   : > { %v2228_v39 = vpop.eup %2227  ;;  %v1301_v41 = vsel %vm804_vm1, %v2226_v36, 0.0  ;;  %v1321_v1 = vpack.c.bf16 %v2226_v36, %v2224_v35 }
 0x490   : > { %v2230_v42 = vpop.eup %2229  ;;  %v1302_v10 = vadd.f32 %v1301_v41, %v1300_v37  ;;  %v1303_v44 = vsel %vm804_vm1, %v2228_v39, 0.0 }
 0x491   : > { %v2232_v23 = vpop.eup %2231  ;;  %v1305_v49 = vsel %vm804_vm1, %v2230_v42, 0.0  ;;  %v1322_v62 = vpack.c.bf16 %v2230_v42, %v2228_v39 }
 0x492   : > { %v2234_v45 = vpop.eup %2233  ;;  %v1304_v46 = vadd.f32 %v1303_v44, %v1302_v10  ;;  %v1307_v52 = vsel %vm804_vm1, %v2232_v23, 0.0 }
 0x493   : > { %v2236_v48 = vpop.eup %2235  ;;  %v1309_v55 = vsel %vm804_vm1, %v2234_v45, 0.0  ;;  %v1323_v56 = vpack.c.bf16 %v2234_v45, %v2232_v23 }
 0x494   : > { %v2238_v50 = vpop.eup %2237  ;;  %v1306_v51 = vadd.f32 %v1305_v49, %v1304_v46  ;;  %v1311_v58 = vsel %vm804_vm1, %v2236_v48, 0.0 }
 0x495   : > { %v1324_v53 = vpack.c.bf16 %v2238_v50, %v2236_v48  ;;  %v1313_v61 = vsel %vm804_vm1, %v2238_v50, 0.0 }
 0x496   : > { %v1308_v54 = vadd.f32 %v1307_v52, %v1306_v51 }
 0x497   : > { %2059 = vmatprep.subr.bf16.mxu1 %v1324_v53 }
 0x498   : > { %v1310_v57 = vadd.f32 %v1309_v55, %v1308_v54  ;;  %2060 = vmatpush3.bf16.msra.mxu1 %v1324_v53 }
 0x499   : > { %2061 = vmatprep.subr.bf16.mxu1 %v1323_v56 }
 0x49a   : > { %v1312_v59 = vadd.f32 %v1311_v58, %v1310_v57 }
 0x49c   : > { %v1314_v0 = vadd.f32 %v1313_v61, %v1312_v59  ;;  %2062 = vmatpush3.bf16.msra.mxu1 %v1323_v56 }
 0x49d   : > { %2063 = vmatprep.subr.bf16.mxu1 %v1322_v62 }
 0x4a0   : > { %2064 = vmatpush3.bf16.msra.mxu1 %v1322_v62 }
 0x4a1   : > { %2065 = vmatprep.subr.bf16.mxu1 %v1321_v1 }
 0x4a4   : > { %2066 = vmatpush3.bf16.msra.mxu1 %v1321_v1 }
 0x4a5   : > { %2071 = vmatprep.subr.bf16.mxu1 %v2471_v38 }
 0x4a7   : > { %2068 = vmatmul.mubr.msk.bf16.vlgmr.msra.gmra.mxu1 %vm804_vm1, %v708_v24  ;;  %v2630_v24 = vpop.f32.mrf.mxu0 }
 0x4a8   : > { %2072 = vmatpush3.bf16.msra.mxu1 %v2471_v38  ;;  %2075 = vmatprep.mubr.msk.bf16.mxu1 %vm389_vm0, %v1395_v2  ;;  %v710_v6 = vpack.c.bf16 %v2630_v24, %v2628_v8  ;;  %v251_v8 = vld [vmem:[%s2745_s3 + $0x10] sm:$0xff]  ;;  %v252_v24 = vld [vmem:[%s2745_s3 + $0x18] sm:$0xff] }
 0x4a9   : > { %2073 = vmatprep.subr.bf16.mxu1 %v2473_v40  ;;  %v675_v38 = vpop.f32.mrf.mxu0 }
 0x4aa   : > { %v709_v7 = vpack.c.bf16 %v675_v38, %v672_v43 }
 0x4ac   : > { %2074 = vmatpush3.bf16.msra.mxu1 %v2473_v40  ;;  %v1315_v40 = vrot.slane %v1314_v0, 4 }
 0x4ae   : > { %v1316_v9 = vadd.f32 %v1315_v40, %v1314_v0 }
 0x4af   : > { %2076 = vmatmul.mubr.msk.bf16.vlgmr.msra.gmra.mxu1 %vm389_vm0, %v1396_v3 }
 0x4b0   : > { %2079 = vmatprep.mubr.msk.bf16.mxu1 %vm389_vm0, %v1397_v4  ;;  %v1317_v11 = vrot.slane %v1316_v9, 2 }
 0x4b2   : > { %v1318_v13 = vadd.f32 %v1317_v11, %v1316_v9 }
 0x4b4   : > { %v1319_v14 = vrot.slane %v1318_v13, 1 }
 0x4b6   : > { %v1320_v15 = vadd.f32 %v1319_v14, %v1318_v13 }
 0x4b7   : > { %2080 = vmatmul.mubr.msk.bf16.gmra.mxu1 %vm389_vm0, %v1398_v5 }
 0x4b8   : > { %2091 = vmatprep.mubr.msk.bf16.mxu1 %vm804_vm1, %v709_v7  ;;  %2239 = vrcp.f32 %v1320_v15 }
 0x4c5   : > { %v2240_v16 = vpop.eup %2239 }
 0x567   : > { %v2069_v17 = vpop.f32.mrf.mxu1 }
 0x568   : > { %v1383_v18 = vmul.f32 %v2240_v16, %v2069_v17 }
 0x569   : > { %v1365_v19 = vpop.f32.mrf.mxu1 }
 0x56a   : > { %v1381_v20 = vmul.f32 %v2240_v16, %v1365_v19 }
 0x56b   : > { %v2070_v21 = vpop.f32.mrf.mxu1 }
 0x56c   : > { %v1384_v22 = vmul.f32 %v2240_v16, %v2070_v21 }
 0x56d   : > { %v1368_v12 = vpop.f32.mrf.mxu1 }
 0x56e   : > { %v2635_v29 = vpack.c.bf16 %v1384_v22, %v1383_v18  ;;  %v1382_v26 = vmul.f32 %v2240_v16, %v1368_v12 }
 0x56f   : > { %v2077_v31 = vpop.f32.mrf.mxu1 }
 0x570   : > { %v2637_v27 = vpack.c.bf16 %v1382_v26, %v1381_v20  ;;  %v1482_v23 = vsel %vm804_vm1, %v2077_v31, -inf }
 0x571   : > { %v1449_v28 = vpop.f32.mrf.mxu1 }
 0x572   : > { %v1480_v44 = vsel %vm804_vm1, %v1449_v28, -inf }
 0x573   : > { %v2078_v30 = vpop.f32.mrf.mxu1 }
 0x574   : > { %v1483_v36 = vsel %vm804_vm1, %v2078_v30, -inf }
 0x575   : > { %v1452_v32 = vpop.f32.mrf.mxu1 }
 0x576   : > { %v1481_v45 = vsel %vm804_vm1, %v1452_v32, -inf }
 0x577   : > { %v2081_v33 = vpop.f32.mrf.mxu1 }
 0x578   : > { %v1488_v37 = vsel %vm804_vm1, %v2081_v33, -inf }
 0x579   : > { %v1465_v34 = vpop.f32.mrf.mxu1  ;;  %v1489_v48 = vmax.f32 %v1482_v23, %v1488_v37 }
 0x57a   : > { %v1484_v39 = vsel %vm804_vm1, %v1465_v34, -inf }
 0x57b   : > { %v2082_v35 = vpop.f32.mrf.mxu1  ;;  %v1485_v49 = vmax.f32 %v1480_v44, %v1484_v39 }
 0x57c   : > { %v1490_v41 = vsel %vm804_vm1, %v2082_v35, -inf }
 0x57d   : > { %v1491_v42 = vmax.f32 %v1483_v36, %v1490_v41  ;;  %v1468_v10 = vpop.f32.mrf.mxu1 }
 0x57e   : > { %v1486_v46 = vsel %vm804_vm1, %v1468_v10, -inf }
 0x57f   : > { %v1487_v50 = vmax.f32 %v1481_v45, %v1486_v46  ;;  %v1493_v51 = vmax.f32 %v1489_v48, %v1491_v42  ;;  %v2185_v48 = vld [vmem:[%s2744_s2] sm:$0xff]  }
 0x580   : > { %2111 = vmatprep.mubr.bf16.mxu0 %v2185_v48 }
 0x581   : > { %v1492_v52 = vmax.f32 %v1485_v49, %v1487_v50  ;;  %v250_v49 = vld [vmem:[%s2745_s3 + $0x8] sm:$0xff]  ;;  %v2321_v50 = vmov 0  }
 0x582   : > { %2158 = vset.pattern.permute.xlu1 %v2321_v50  ;;  %2157 = vset.pattern.permute.xlu0 %v2321_v50 }
 0x583   : > { %v1494_v53 = vmax.f32 %v1492_v52, %v1493_v51  ;;  %v249_v51 = vld [vmem:[%s2745_s3] sm:$0xff]  ;;  %1619 = vperm.xlu1 %2158, %v250_v49  }
 0x584   : > { %1614 = vperm.xlu0 %2157, %v249_v51  }
 0x585   : > { %v1495_v54 = vrot.slane %v1494_v53, 4 }
 0x587   : > { %v1496_v55 = vmax.f32 %v1494_v53, %v1495_v54  ;;  %1624 = vperm.xlu1 %2158, %v251_v8  }
 0x589   : > { %v1497_v56 = vrot.slane %v1496_v55, 2 }
 0x58b   : > { %v1498_v57 = vmax.f32 %v1496_v55, %v1497_v56  ;;  %1629 = vperm.xlu1 %2158, %v252_v24  }
 0x58d   : > { %v1499_v58 = vrot.slane %v1498_v57, 1 }
 0x58f   : > { %v1500_v59 = vmax.f32 %v1498_v57, %v1499_v58 }
 0x591   : > { %v1501_v61 = vsub.f32 %v1449_v28, %v1500_v59  ;;  %v1502_v62 = vsub.f32 %v1452_v32, %v1500_v59  ;;  %v1503_v0 = vsub.f32 %v2077_v31, %v1500_v59  ;;  %v1504_v1 = vsub.f32 %v2078_v30, %v1500_v59 }
 0x592   : > { %v1505_v2 = vsub.f32 %v1465_v34, %v1500_v59  ;;  %v1506_v3 = vsub.f32 %v1468_v10, %v1500_v59  ;;  %v1507_v38 = vsub.f32 %v2081_v33, %v1500_v59  ;;  %v1508_v40 = vsub.f32 %v2082_v35, %v1500_v59 }
 0x593   : > { %v1509_v4 = vmul.f32 1.442695, %v1501_v61  ;;  %v1511_v5 = vmul.f32 1.442695, %v1502_v62  ;;  %v1513_v43 = vmul.f32 1.442695, %v1503_v0 }
 0x594   : > { %v1515_v7 = vmul.f32 1.442695, %v1504_v1  ;;  %v1517_v9 = vmul.f32 1.442695, %v1505_v2  ;;  %v1519_v11 = vmul.f32 1.442695, %v1506_v3 }
 0x595   : > { %2241 = vpow2.f32 %v1509_v4  ;;  %v1521_v13 = vmul.f32 1.442695, %v1507_v38  ;;  %v1523_v14 = vmul.f32 1.442695, %v1508_v40 }
 0x596   : > { %2243 = vpow2.f32 %v1511_v5 }
 0x597   : > { %2245 = vpow2.f32 %v1513_v43 }
 0x598   : > { %2247 = vpow2.f32 %v1515_v7 }
 0x599   : > { %2249 = vpow2.f32 %v1517_v9 }
 0x59a   : > { %2251 = vpow2.f32 %v1519_v11 }
 0x59b   : > { %2253 = vpow2.f32 %v1521_v13 }
 0x59c   : > { %2255 = vpow2.f32 %v1523_v14 }
 0x5a2   : > { %v2242_v15 = vpop.eup %2241 }
 0x5a3   : > { %v2244_v16 = vpop.eup %2243  ;;  %v1525_v17 = vsel %vm804_vm1, %v2242_v15, 0.0 }
 0x5a4   : > { %v2246_v18 = vpop.eup %2245  ;;  %v1526_v19 = vsel %vm804_vm1, %v2244_v16, 0.0  ;;  %v1546_v46 = vpack.c.bf16 %v2244_v16, %v2242_v15 }
 0x5a5   : > { %v2248_v20 = vpop.eup %2247  ;;  %v1527_v21 = vadd.f32 %v1526_v19, %v1525_v17  ;;  %v1528_v12 = vsel %vm804_vm1, %v2246_v18, 0.0 }
 0x5a6   : > { %v2250_v22 = vpop.eup %2249  ;;  %v1530_v30 = vsel %vm804_vm1, %v2248_v20, 0.0  ;;  %v1547_v44 = vpack.c.bf16 %v2248_v20, %v2246_v18 }
 0x5a7   : > { %v2252_v26 = vpop.eup %2251  ;;  %v1529_v31 = vadd.f32 %v1528_v12, %v1527_v21  ;;  %v1532_v34 = vsel %vm804_vm1, %v2250_v22, 0.0 }
 0x5a8   : > { %v2254_v28 = vpop.eup %2253  ;;  %v1534_v37 = vsel %vm804_vm1, %v2252_v26, 0.0  ;;  %v1548_v39 = vpack.c.bf16 %v2252_v26, %v2250_v22 }
 0x5a9   : > { %v2256_v32 = vpop.eup %2255  ;;  %v1531_v33 = vadd.f32 %v1530_v30, %v1529_v31  ;;  %v1536_v42 = vsel %vm804_vm1, %v2254_v28, 0.0 }
 0x5aa   : > { %v1549_v35 = vpack.c.bf16 %v2256_v32, %v2254_v28  ;;  %v1538_v23 = vsel %vm804_vm1, %v2256_v32, 0.0 }
 0x5ab   : > { %v1533_v36 = vadd.f32 %v1532_v34, %v1531_v33 }
 0x5ac   : > { %2083 = vmatprep.subr.bf16.mxu1 %v1549_v35 }
 0x5ad   : > { %v1535_v41 = vadd.f32 %v1534_v37, %v1533_v36  ;;  %2084 = vmatpush3.bf16.msra.mxu1 %v1549_v35 }
 0x5ae   : > { %2085 = vmatprep.subr.bf16.mxu1 %v1548_v39 }
 0x5af   : > { %v1537_v10 = vadd.f32 %v1536_v42, %v1535_v41 }
 0x5b1   : > { %v1539_v45 = vadd.f32 %v1538_v23, %v1537_v10  ;;  %2086 = vmatpush3.bf16.msra.mxu1 %v1548_v39 }
 0x5b2   : > { %2087 = vmatprep.subr.bf16.mxu1 %v1547_v44 }
 0x5b5   : > { %2088 = vmatpush3.bf16.msra.mxu1 %v1547_v44 }
 0x5b6   : > { %2089 = vmatprep.subr.bf16.mxu1 %v1546_v46 }
 0x5b9   : > { %2090 = vmatpush3.bf16.msra.mxu1 %v1546_v46 }
 0x5bc   : > { %2092 = vmatmul.mubr.msk.bf16.vlgmr.msra.gmra.mxu1 %vm804_vm1, %v710_v6  ;;  %v1540_v6 = vrot.slane %v1539_v45, 4 }
 0x5be   : > { %v1541_v52 = vadd.f32 %v1540_v6, %v1539_v45 }
 0x5c0   : > { %v1542_v53 = vrot.slane %v1541_v52, 2 }
 0x5c2   : > { %v1543_v54 = vadd.f32 %v1542_v53, %v1541_v52 }
 0x5c4   : > { %v1544_v55 = vrot.slane %v1543_v54, 1 }
 0x5c6   : > { %v1545_v56 = vadd.f32 %v1544_v55, %v1543_v54 }
 0x5c8   : > { %2257 = vrcp.f32 %v1545_v56 }
 0x5d5   : > { %v2258_v59 = vpop.eup %2257 }
 0x67c   : > { %v2093_v57 = vpop.f32.mrf.mxu1 }
 0x67d   : > { %v1608_v62 = vmul.f32 %v2258_v59, %v2093_v57 }
 0x67e   : > { %v1590_v58 = vpop.f32.mrf.mxu1 }
 0x67f   : > { %v1606_v2 = vmul.f32 %v2258_v59, %v1590_v58 }
 0x680   : > { %v2094_v61 = vpop.f32.mrf.mxu1 }
 0x681   : > { %v1609_v0 = vmul.f32 %v2258_v59, %v2094_v61 }
 0x682   : > { %v1593_v1 = vpop.f32.mrf.mxu1 }
 0x683   : > { %v1611_v3 = vpack.c.bf16 %v1609_v0, %v1608_v62  ;;  %v1607_v4 = vmul.f32 %v2258_v59, %v1593_v1 }
 0x685   : > { %v1610_v5 = vpack.c.bf16 %v1607_v4, %v1606_v2  ;;  %2095 = vmatprep.subr.bf16.mxu0 %v1611_v3 }
 0x686   : > { %2096 = vmatpush3.bf16.msra.mxu0 %v1611_v3 }
 0x687   : > { %2097 = vmatprep.subr.bf16.mxu0 %v1610_v5 }
 0x68a   : > { %2098 = vmatpush3.bf16.msra.mxu0 %v1610_v5 }
 0x68b   : > { %2099 = vmatprep.subr.bf16.mxu0 %v2635_v29 }
 0x68e   : > { %2100 = vmatpush3.bf16.msra.mxu0 %v2635_v29  ;;  %v2186_v29 = vld [vmem:[%s2744_s2 + $0x8] sm:$0xff]  }
 0x68f   : > { %2101 = vmatprep.subr.bf16.mxu0 %v2637_v27 }
 0x692   : > { %2102 = vmatpush3.bf16.msra.mxu0 %v2637_v27  ;;  %v1620_v27 = vpop.permute.xlu1 %1619 }
 0x693   : > { %2103 = vmatprep.subr.bf16.mxu0 %v2596_v25 }
 0x696   : > { %2104 = vmatpush3.bf16.msra.mxu0 %v2596_v25  ;;  %v1625_v25 = vpop.permute.xlu1 %1624 }
 0x697   : > { %2105 = vmatprep.subr.bf16.mxu0 %v2598_v47 }
 0x69a   : > { %2106 = vmatpush3.bf16.msra.mxu0 %v2598_v47  ;;  %v1615_v47 = vpop.permute.xlu0 %1614  ;;  %v1630_v9 = vpop.permute.xlu1 %1629 }
 0x69b   : > { %2107 = vmatprep.subr.bf16.mxu0 %v2549_v60 }
 0x69e   : > { %2108 = vmatpush3.bf16.msra.mxu0 %v2549_v60 }
 0x69f   : > { %2109 = vmatprep.subr.bf16.mxu0 %v2551_v63 }
 0x6a2   : > { %2110 = vmatpush3.bf16.msra.mxu0 %v2551_v63 }
 0x6a5   : > { %2112 = vmatmul.mubr.bf16.vlgmr.msra.gmra.mxu0 %v2186_v29 }
 0x765   : > { %v2113_v43 = vpop.f32.mrf.mxu0 }
 0x766   : > { %v1687_v38 = vadd.f32 %v2113_v43, %v1625_v25 }
 0x767   : > { %v1678_v7 = vpop.f32.mrf.mxu0 }
 0x768   : > { %1695 = vst.msk [vmem:[%s190_s23 + $0x10] sm:$0xff] %vm804_vm1, %v1687_v38  ;;  %v1679_v60 = vadd.f32 %v1678_v7, %v1615_v47 }
 0x769   : > { %v2114_v40 = vpop.f32.mrf.mxu0 }
 0x76a   : > { %v1690_v11 = vadd.f32 %v2114_v40, %v1630_v9  ;;  %1693 = vst.msk [vmem:[%s190_s23] sm:$0xff] %vm804_vm1, %v1679_v60 }
 0x76b   : > { %v1681_v63 = vpop.f32.mrf.mxu0 }
 0x76c   : > { %1696 = vst.msk [vmem:[%s190_s23 + $0x18] sm:$0xff] %vm804_vm1, %v1690_v11  ;;  %v1682_v13 = vadd.f32 %v1681_v63, %v1620_v27 }
 0x76e   : > { %1694 = vst.msk [vmem:[%s190_s23 + $0x8] sm:$0xff] %vm804_vm1, %v1682_v13 }
 0x76f   : > { %2272 = shalt.err (!%p2269_p3)
}
 0x770   : > { %s2273_s10 = scalar_lea.hbm %s2698_s5, 512  ;;  %s2277_s13 = scalar_lea.hbm %s2746_s4, 1024 }
 0x771   : > { %p2274_p4 = scmp.ne.s32.totalorder %s2698_s5, %s2273_s10  ;;  %p2278_p9 = scmp.lt.s32.totalorder %s2698_s5, %s2746_s4 }
 0x772   : > { %p2279_p10 = scmp.lt.s32.totalorder %s2277_s13, %s2273_s10 }
 0x773   : > { %p2275_p7 = pnand %p2274_p4, %p2388_p5 }
 0x774   : > { %p2280_p11 = por %p2279_p10, %p2278_p9 }
 0x775   : > { %p2276_p8 = pneg %p2275_p7 }
 0x777   : > { %p2281_p12 = pnand %p2280_p11, %p2276_p8 }
 0x779   : > { %2284 = shalt.err (!%p2281_p12)
}
 0x77a   : > { %s2323_s22 = smov 128   ;;  %s2324_s23 = smov 8  }
 0x77b   : > { %2115 = dma.vmem_to_hbm [thread:$0]  (%p2388_p5), %s2693_s27, 512, %s2698_s5, %s2702_s19, %s2323_s22, %s2323_s22, %s2324_s23  }
 0x77c PF: > { %p2121_p13 = scmp.ge.s32.totalorder %s2319_s18, 2  ;;  %s1726_s28 = sand.u32 1, %s2307_s15  }
 0x77d   : > { %s1727_s29 = scalar_lea.sflag [#allocation3], %s1726_s28 }
 0x77e   : > { %p2118_p0 = pnand %p2121_p13, %p2392_p6 }
 0x780   : > { %p2119_p1 = pneg %p2118_p0 }
 0x782   : > { %2302 = dma.done.wait (%p2119_p1), %s1727_s29, 512  }
 0x783   : > { %2304 = vsyncadd (%p2119_p1), %s1727_s29, 4294966784  ;;  %p14_p2 = scmp.ge.s32.totalorder %s2375_s21, 4   ;;  %s2749_s15 = smov %s2311_s16 }
 0x784   : > { %s2750_s16 = smov %s2315_s17  ;;  %s2751_s17 = smov %s2386_s24 }
 0x785   : > { %s2752_s18 = smov %s2375_s21  ;;  %16 = sbr.rel (!%p14_p2) target bundleno = 3 (0x3), region = 71 }
 0x78a   :  { %1732 = vsyncpa [#allocation3], 1 }
 0x78b   :  { %1734 = vsyncpa [#allocation3 + $0x1], 1 }

</bundles_post_ra>
